<compile_context>
chip_gen: v5e
topology: v5e:2x2
jax: 0.10.0
libtpu: 0.0.40
codegen_flags: <defaults>
</compile_context>

<pallas_src>
import jax
import jax.numpy as jnp
from jax.experimental import pallas as pl
from jax.experimental.pallas import tpu as pltpu

# ---- small, module-consistent hyperparameters ----
B = 2            # batch
SQ = 8           # query (decoder) sequence length
SK = 16          # key/value (encoder) sequence length
D_MODEL = 32     # config.d_model
D_KV = 16        # config.d_kv (per-head dim)
N_HEADS = 4      # config.num_heads
N_KV_HEADS = 2   # config.num_key_value_heads
GROUPS = N_HEADS // N_KV_HEADS
D2 = D_KV // 2   # rotary half
THETA = 10000.0  # RoPE theta

INNER = N_HEADS * D_KV          # 64
KV_INNER = N_KV_HEADS * D_KV    # 32
QW = 2 * INNER                  # 128  lanes: [wq | wq_rot]
# kv half lanes: [wk | wk_rot | wv | pad] -> 128


def _bf16(x):
    return x.astype(jnp.bfloat16)


def _dot32(a, b):
    # MXU-friendly: bf16 operands, f32 accumulation.
    return jnp.dot(_bf16(a), _bf16(b), preferred_element_type=jnp.float32)


def rot5_attention_kernel(h_ref, kv_ref, w_ref, wo_ref, rope_ref, out_ref):
    bb = h_ref.shape[0]                                # batch block (= B)

    # fold batch into sublanes (tile-aligned reshapes: SQ=8, SK=16)
    hid = h_ref[...].reshape(bb * SQ, D_MODEL)         # (16, 32)
    enc = kv_ref[...].reshape(bb * SK, D_MODEL)        # (32, 32)
    w = w_ref[...]                                     # (32, 256) f32
    wo = wo_ref[...]                                   # (64, 32)  f32
    rope = rope_ref[...]                               # (48, 128) f32

    # fused projections on the two 128-lane slab halves
    qq = _dot32(hid, w[:, :QW])                        # (16, 128) = [q | q_rot]
    kk = _dot32(enc, w[:, QW:])                        # (32, 128) = [k | k_rot | v | pad]

    # RoPE = pure elementwise FMA (rotation folded into wq_rot / wk_rot,
    # rotate sign baked into sin tables; tables pre-tiled over heads & batch)
    cqw = rope[:bb * SQ, :INNER]                       # (16, 64)
    sqw = rope[:bb * SQ, INNER:2 * INNER]              # (16, 64)
    ckw = rope[bb * SQ:bb * SQ + bb * SK, :KV_INNER]   # (32, 32)
    skw = rope[bb * SQ:bb * SQ + bb * SK, KV_INNER:2 * KV_INNER]

    rq = qq[:, :INNER] * cqw + qq[:, INNER:] * sqw                     # (16, 64)
    rk = kk[:, :KV_INNER] * ckw + kk[:, KV_INNER:2 * KV_INNER] * skw   # (32, 32)
    vv = kk[:, 2 * KV_INNER:3 * KV_INNER]                              # (32, 32)

    # per-kv-head scores with the GROUPS query heads of each group stacked
    # along the query/sublane axis -> one einsum per kv head (T5-style, no 1/sqrt(d))
    scores_g = []
    v_g = []
    for g in range(N_KV_HEADS):
        rk_g = rk[:, g * D_KV:(g + 1) * D_KV].reshape(bb, SK, D_KV)
        vv_g = vv[:, g * D_KV:(g + 1) * D_KV].reshape(bb, SK, D_KV)
        q_parts = [
            rq[:, (g * GROUPS + j) * D_KV:(g * GROUPS + j + 1) * D_KV]
            .reshape(bb, SQ, D_KV)
            for j in range(GROUPS)
        ]
        rq_g = jnp.concatenate(q_parts, axis=1)        # (bb, GROUPS*SQ, D_KV)
        s_g = jnp.einsum('bqd,bkd->bqk', _bf16(rq_g), _bf16(rk_g),
                         preferred_element_type=jnp.float32)
        scores_g.append(s_g)                           # (bb, GROUPS*SQ, SK)
        v_g.append(vv_g)

    # softmax batched over all (group, head, query) rows
    scores = jnp.concatenate(scores_g, axis=1)         # (bb, N_HEADS*SQ, SK)
    m = jnp.max(scores, axis=-1, keepdims=True)
    e = jnp.exp(scores - m)
    p = e * pl.reciprocal(jnp.sum(e, axis=-1, keepdims=True), approx=True)

    # context + output projection accumulated over heads (no lane concatenation)
    out = jnp.zeros((bb * SQ, D_MODEL), jnp.float32)
    for g in range(N_KV_HEADS):
        p_g = p[:, g * GROUPS * SQ:(g + 1) * GROUPS * SQ, :]
        ctx_g = jnp.einsum('bqk,bkd->bqd', _bf16(p_g), _bf16(v_g[g]),
                           preferred_element_type=jnp.float32)  # (bb, GROUPS*SQ, D_KV)
        for j in range(GROUPS):
            h = g * GROUPS + j
            ctx_h = ctx_g[:, j * SQ:(j + 1) * SQ, :].reshape(bb * SQ, D_KV)
            out = out + _dot32(ctx_h, wo[h * D_KV:(h + 1) * D_KV, :])

    out_ref[...] = out.reshape(bb, SQ, D_MODEL)


def rot5_attention(hidden, kv, w_slab, wo, rope_slab):
    # single collapsed invocation on all TPU generations (batch in sublanes)
    in_specs = [
        pl.BlockSpec((B, SQ, D_MODEL), lambda i: (0, 0, 0)),   # hidden_states
        pl.BlockSpec((B, SK, D_MODEL), lambda i: (0, 0, 0)),   # key_value_states
        pl.BlockSpec(w_slab.shape, lambda i: (0, 0)),          # packed projection weights
        pl.BlockSpec(wo.shape, lambda i: (0, 0)),              # output projection
        pl.BlockSpec(rope_slab.shape, lambda i: (0, 0)),       # packed RoPE tables
    ]
    out_spec = pl.BlockSpec((B, SQ, D_MODEL), lambda i: (0, 0, 0))
    return pl.pallas_call(
        rot5_attention_kernel,
        out_shape=jax.ShapeDtypeStruct((B, SQ, D_MODEL), jnp.float32),
        grid=(1,),
        in_specs=in_specs,
        out_specs=out_spec,
        compiler_params=pltpu.CompilerParams(
            dimension_semantics=("arbitrary",)),
    )(hidden, kv, w_slab, wo, rope_slab)


# ----------------- wrapper-side operand packing -----------------
def pack_operands(wq, wk, wv, cos_q, sin_q, cos_k, sin_k):
    # rotate_half is a fixed permutation of each head's output features
    # (sign goes into the sin table) -> fold it into permuted weight columns.
    rot_idx = (jnp.arange(D_KV) + D2) % D_KV
    q_idx = (jnp.arange(N_HEADS)[:, None] * D_KV + rot_idx[None, :]).reshape(-1)
    k_idx = (jnp.arange(N_KV_HEADS)[:, None] * D_KV + rot_idx[None, :]).reshape(-1)
    wq_rot = wq[:, q_idx]
    wk_rot = wk[:, k_idx]
    pad = jnp.zeros((D_MODEL, 2 * D_KV), jnp.float32)
    # (32, 256): lanes [0:128] = [wq | wq_rot], lanes [128:256] = [wk | wk_rot | wv | pad]
    w_slab = jnp.concatenate([wq, wq_rot, wk, wk_rot, wv, pad], axis=1)

    # full-width RoPE tables (cos duplicated, rotate sign baked into sin),
    # tiled over heads along lanes and over batch along sublanes.
    cos_qf = jnp.concatenate([cos_q, cos_q], -1)       # (SQ, D_KV)
    sin_qf = jnp.concatenate([-sin_q, sin_q], -1)
    cos_kf = jnp.concatenate([cos_k, cos_k], -1)       # (SK, D_KV)
    sin_kf = jnp.concatenate([-sin_k, sin_k], -1)
    cqw = jnp.tile(cos_qf, (B, N_HEADS))               # (B*SQ, 64)
    sqw = jnp.tile(sin_qf, (B, N_HEADS))
    ckw = jnp.tile(cos_kf, (B, N_KV_HEADS))            # (B*SK, 32)
    skw = jnp.tile(sin_kf, (B, N_KV_HEADS))
    rope_q = jnp.concatenate([cqw, sqw], axis=1)                       # (16, 128)
    rope_k = jnp.concatenate(
        [ckw, skw, jnp.zeros((B * SK, QW - 2 * KV_INNER), jnp.float32)], axis=1)  # (32, 128)
    rope_slab = jnp.concatenate([rope_q, rope_k], axis=0)              # (48, 128)
    return w_slab, rope_slab


# ----------------- pure-JAX reference (mirrors PyTorch forward) -----------------
def ref_forward(hidden, kv, wq, wk, wv, wo, cos_qh, sin_qh, cos_kh, sin_kh):
    q = hidden @ wq                              # (B, SQ, H*D_KV)
    k = kv @ wk                                  # (B, SK, Hkv*D_KV)
    v = kv @ wv
    qh = q.reshape(B, SQ, N_HEADS, D_KV).transpose(0, 2, 1, 3)
    kh = k.reshape(B, SK, N_KV_HEADS, D_KV).transpose(0, 2, 1, 3)
    vh = v.reshape(B, SK, N_KV_HEADS, D_KV).transpose(0, 2, 1, 3)
    kh = jnp.repeat(kh, GROUPS, axis=1)          # repeat_interleave over heads
    vh = jnp.repeat(vh, GROUPS, axis=1)

    def rope(x, c_half, s_half):
        cos = jnp.concatenate([c_half, c_half], -1)[None, None]
        sin = jnp.concatenate([s_half, s_half], -1)[None, None]
        xs = jnp.concatenate([-x[..., D2:], x[..., :D2]], -1)
        return x * cos + xs * sin

    qh = rope(qh, cos_qh, sin_qh)                # positions 0..SQ-1
    kh = rope(kh, cos_kh, sin_kh)                # positions 0..SK-1

    scores = jnp.einsum("bhqd,bhkd->bhqk", qh, kh)     # no scaling (T5-style)
    attn = jax.nn.softmax(scores.astype(jnp.float32), axis=-1)
    ctx = jnp.einsum("bhqk,bhkd->bhqd", attn, vh)
    ctx = ctx.transpose(0, 2, 1, 3).reshape(B, SQ, N_HEADS * D_KV)
    return ctx @ wo


if __name__ == "__main__":
    key = jax.random.PRNGKey(0)
    k_h, k_kv, k_wq, k_wk, k_wv, k_wo = jax.random.split(key, 6)

    hidden = jax.random.normal(k_h, (B, SQ, D_MODEL), jnp.float32)
    key_value_states = jax.random.normal(k_kv, (B, SK, D_MODEL), jnp.float32)

    scale = 0.05
    wq = scale * jax.random.normal(k_wq, (D_MODEL, INNER), jnp.float32)
    wk = scale * jax.random.normal(k_wk, (D_MODEL, KV_INNER), jnp.float32)
    wv = scale * jax.random.normal(k_wv, (D_MODEL, KV_INNER), jnp.float32)
    wo = scale * jax.random.normal(k_wo, (INNER, D_MODEL), jnp.float32)

    # ROPEEmbedding(d_model=d_kv, theta=10000), positions 0..len-1
    inv_freq = 1.0 / (THETA ** (jnp.arange(0, D_KV, 2, dtype=jnp.float32) / D_KV))
    freqs_q = jnp.outer(jnp.arange(SQ, dtype=jnp.float32), inv_freq)
    freqs_k = jnp.outer(jnp.arange(SK, dtype=jnp.float32), inv_freq)
    cos_q, sin_q = jnp.cos(freqs_q), jnp.sin(freqs_q)         # (SQ, D2)
    cos_k, sin_k = jnp.cos(freqs_k), jnp.sin(freqs_k)         # (SK, D2)

    w_slab, rope_slab = pack_operands(wq, wk, wv, cos_q, sin_q, cos_k, sin_k)

    out = rot5_attention(hidden, key_value_states, w_slab, wo, rope_slab)
    out = jax.block_until_ready(out)

    ref = ref_forward(hidden, key_value_states, wq, wk, wv, wo,
                      cos_q, sin_q, cos_k, sin_k)
    ref = jax.block_until_ready(ref)

    assert out.shape == (B, SQ, D_MODEL)
    assert bool(jnp.all(jnp.isfinite(out)))
    assert bool(jnp.allclose(out, ref, atol=2e-2, rtol=2e-2)), "mismatch vs reference"

    # TODO(synk): past_key_value / use_cache incremental-decode cache, attention
    # mask, layer_head_mask and training-mode dropout are not implemented; forward
    # matches the eval-mode call with key_value_states given and those args None/False.
    print("KERNEL_OK")
</pallas_src>

<mosaic_0001>
module attributes {stable_mosaic.version = 11 : i64} {
  func.func @rot5_attention_kernel(%arg0: i32, %arg1: memref<2x8x32xf32, #tpu.memory_space<vmem>>, %arg2: memref<2x16x32xf32, #tpu.memory_space<vmem>>, %arg3: memref<32x256xf32, #tpu.memory_space<vmem>>, %arg4: memref<64x32xf32, #tpu.memory_space<vmem>>, %arg5: memref<48x128xf32, #tpu.memory_space<vmem>>, %arg6: memref<2x8x32xf32, #tpu.memory_space<vmem>>) attributes {dimension_semantics = [#tpu.dimension_semantics<arbitrary>], iteration_bounds = array<i64: 1>, scalar_prefetch = 0 : i64, scratch_operands = 0 : i64, tpu.core_type = #tpu.core_type<tc>, window_params = [{pipeline_mode = #tpu.pipeline_mode<synchronous>, transform_indices = @transform_0, window_bounds = array<i64: 2, 8, 32>}, {pipeline_mode = #tpu.pipeline_mode<synchronous>, transform_indices = @transform_1, window_bounds = array<i64: 2, 16, 32>}, {pipeline_mode = #tpu.pipeline_mode<synchronous>, transform_indices = @transform_2, window_bounds = array<i64: 32, 256>}, {pipeline_mode = #tpu.pipeline_mode<synchronous>, transform_indices = @transform_3, window_bounds = array<i64: 64, 32>}, {pipeline_mode = #tpu.pipeline_mode<synchronous>, transform_indices = @transform_4, window_bounds = array<i64: 48, 128>}, {pipeline_mode = #tpu.pipeline_mode<synchronous>, transform_indices = @transform_5, window_bounds = array<i64: 2, 8, 32>}]} {
    %c0 = arith.constant 0 : index
    %c0_0 = arith.constant 0 : index
    %c0_1 = arith.constant 0 : index
    %0 = vector.load %arg1[%c0, %c0_0, %c0_1] : memref<2x8x32xf32, #tpu.memory_space<vmem>>, vector<2x8x32xf32>
    %1 = vector.shape_cast %0 : vector<2x8x32xf32> to vector<16x32xf32>
    %c0_2 = arith.constant 0 : index
    %c0_3 = arith.constant 0 : index
    %c0_4 = arith.constant 0 : index
    %2 = vector.load %arg2[%c0_2, %c0_3, %c0_4] : memref<2x16x32xf32, #tpu.memory_space<vmem>>, vector<2x16x32xf32>
    %3 = vector.shape_cast %2 : vector<2x16x32xf32> to vector<32x32xf32>
    %c0_5 = arith.constant 0 : index
    %c0_6 = arith.constant 0 : index
    %4 = vector.load %arg3[%c0_5, %c0_6] : memref<32x256xf32, #tpu.memory_space<vmem>>, vector<32x256xf32>
    %c0_7 = arith.constant 0 : index
    %c0_8 = arith.constant 0 : index
    %5 = vector.load %arg4[%c0_7, %c0_8] : memref<64x32xf32, #tpu.memory_space<vmem>>, vector<64x32xf32>
    %c0_9 = arith.constant 0 : index
    %c0_10 = arith.constant 0 : index
    %6 = vector.load %arg5[%c0_9, %c0_10] : memref<48x128xf32, #tpu.memory_space<vmem>>, vector<48x128xf32>
    %7 = vector.extract_strided_slice %4 {offsets = [0, 0], sizes = [32, 128], strides = [1, 1]} : vector<32x256xf32> to vector<32x128xf32>
    %8 = arith.truncf %1 : vector<16x32xf32> to vector<16x32xbf16>
    %9 = arith.truncf %7 : vector<32x128xf32> to vector<32x128xbf16>
    %cst = arith.constant dense<0.000000e+00> : vector<16x128xf32>
    %10 = tpu.matmul %8, %9, %cst {dimension_numbers = #tpu.dot_dimension_numbers<[1], [0], [0], [1], [0, 0, 1, 1], [], []>} : vector<16x32xbf16>, vector<32x128xbf16>, vector<16x128xf32> -> vector<16x128xf32>
    %11 = vector.extract_strided_slice %4 {offsets = [0, 128], sizes = [32, 128], strides = [1, 1]} : vector<32x256xf32> to vector<32x128xf32>
    %12 = arith.truncf %3 : vector<32x32xf32> to vector<32x32xbf16>
    %13 = arith.truncf %11 : vector<32x128xf32> to vector<32x128xbf16>
    %cst_11 = arith.constant dense<0.000000e+00> : vector<32x128xf32>
    %14 = tpu.matmul %12, %13, %cst_11 {dimension_numbers = #tpu.dot_dimension_numbers<[1], [0], [0], [1], [0, 0, 1, 1], [], []>} : vector<32x32xbf16>, vector<32x128xbf16>, vector<32x128xf32> -> vector<32x128xf32>
    %15 = vector.extract_strided_slice %6 {offsets = [0, 0], sizes = [16, 64], strides = [1, 1]} : vector<48x128xf32> to vector<16x64xf32>
    %16 = vector.extract_strided_slice %6 {offsets = [0, 64], sizes = [16, 64], strides = [1, 1]} : vector<48x128xf32> to vector<16x64xf32>
    %17 = vector.extract_strided_slice %6 {offsets = [16, 0], sizes = [32, 32], strides = [1, 1]} : vector<48x128xf32> to vector<32x32xf32>
    %18 = vector.extract_strided_slice %6 {offsets = [16, 32], sizes = [32, 32], strides = [1, 1]} : vector<48x128xf32> to vector<32x32xf32>
    %19 = vector.extract_strided_slice %10 {offsets = [0, 0], sizes = [16, 64], strides = [1, 1]} : vector<16x128xf32> to vector<16x64xf32>
    %20 = arith.mulf %19, %15 : vector<16x64xf32>
    %21 = vector.extract_strided_slice %10 {offsets = [0, 64], sizes = [16, 64], strides = [1, 1]} : vector<16x128xf32> to vector<16x64xf32>
    %22 = arith.mulf %21, %16 : vector<16x64xf32>
    %23 = arith.addf %20, %22 : vector<16x64xf32>
    %24 = vector.extract_strided_slice %14 {offsets = [0, 0], sizes = [32, 32], strides = [1, 1]} : vector<32x128xf32> to vector<32x32xf32>
    %25 = arith.mulf %24, %17 : vector<32x32xf32>
    %26 = vector.extract_strided_slice %14 {offsets = [0, 32], sizes = [32, 32], strides = [1, 1]} : vector<32x128xf32> to vector<32x32xf32>
    %27 = arith.mulf %26, %18 : vector<32x32xf32>
    %28 = arith.addf %25, %27 : vector<32x32xf32>
    %29 = vector.extract_strided_slice %14 {offsets = [0, 64], sizes = [32, 32], strides = [1, 1]} : vector<32x128xf32> to vector<32x32xf32>
    %30 = vector.extract_strided_slice %28 {offsets = [0, 0], sizes = [32, 16], strides = [1, 1]} : vector<32x32xf32> to vector<32x16xf32>
    %31 = vector.shape_cast %30 : vector<32x16xf32> to vector<2x16x16xf32>
    %32 = vector.extract_strided_slice %29 {offsets = [0, 0], sizes = [32, 16], strides = [1, 1]} : vector<32x32xf32> to vector<32x16xf32>
    %33 = vector.shape_cast %32 : vector<32x16xf32> to vector<2x16x16xf32>
    %34 = vector.extract_strided_slice %23 {offsets = [0, 0], sizes = [16, 16], strides = [1, 1]} : vector<16x64xf32> to vector<16x16xf32>
    %35 = vector.shape_cast %34 : vector<16x16xf32> to vector<2x8x16xf32>
    %36 = vector.extract_strided_slice %23 {offsets = [0, 16], sizes = [16, 16], strides = [1, 1]} : vector<16x64xf32> to vector<16x16xf32>
    %37 = vector.shape_cast %36 : vector<16x16xf32> to vector<2x8x16xf32>
    %38 = tpu.concatenate %35, %37 in 1 : vector<2x8x16xf32>, vector<2x8x16xf32> -> vector<2x16x16xf32>
    %39 = arith.truncf %38 : vector<2x16x16xf32> to vector<2x16x16xbf16>
    %40 = arith.truncf %31 : vector<2x16x16xf32> to vector<2x16x16xbf16>
    "tpu.trace_start"() <{level = 10 : i32, message = "bqd,bkd->bqk"}> : () -> ()
    %cst_12 = arith.constant dense<0.000000e+00> : vector<2x16x16xf32>
    %41 = tpu.matmul %39, %40, %cst_12 {dimension_numbers = #tpu.dot_dimension_numbers<[2], [2], [1], [1], [0, 0, 0, 1, 1, 1], [0], [0]>} : vector<2x16x16xbf16>, vector<2x16x16xbf16>, vector<2x16x16xf32> -> vector<2x16x16xf32>
    "tpu.trace_stop"() : () -> ()
    %42 = vector.extract_strided_slice %28 {offsets = [0, 16], sizes = [32, 16], strides = [1, 1]} : vector<32x32xf32> to vector<32x16xf32>
    %43 = vector.shape_cast %42 : vector<32x16xf32> to vector<2x16x16xf32>
    %44 = vector.extract_strided_slice %29 {offsets = [0, 16], sizes = [32, 16], strides = [1, 1]} : vector<32x32xf32> to vector<32x16xf32>
    %45 = vector.shape_cast %44 : vector<32x16xf32> to vector<2x16x16xf32>
    %46 = vector.extract_strided_slice %23 {offsets = [0, 32], sizes = [16, 16], strides = [1, 1]} : vector<16x64xf32> to vector<16x16xf32>
    %47 = vector.shape_cast %46 : vector<16x16xf32> to vector<2x8x16xf32>
    %48 = vector.extract_strided_slice %23 {offsets = [0, 48], sizes = [16, 16], strides = [1, 1]} : vector<16x64xf32> to vector<16x16xf32>
    %49 = vector.shape_cast %48 : vector<16x16xf32> to vector<2x8x16xf32>
    %50 = tpu.concatenate %47, %49 in 1 : vector<2x8x16xf32>, vector<2x8x16xf32> -> vector<2x16x16xf32>
    %51 = arith.truncf %50 : vector<2x16x16xf32> to vector<2x16x16xbf16>
    %52 = arith.truncf %43 : vector<2x16x16xf32> to vector<2x16x16xbf16>
    "tpu.trace_start"() <{level = 10 : i32, message = "bqd,bkd->bqk"}> : () -> ()
    %cst_13 = arith.constant dense<0.000000e+00> : vector<2x16x16xf32>
    %53 = tpu.matmul %51, %52, %cst_13 {dimension_numbers = #tpu.dot_dimension_numbers<[2], [2], [1], [1], [0, 0, 0, 1, 1, 1], [0], [0]>} : vector<2x16x16xbf16>, vector<2x16x16xbf16>, vector<2x16x16xf32> -> vector<2x16x16xf32>
    "tpu.trace_stop"() : () -> ()
    %54 = tpu.concatenate %41, %53 in 1 : vector<2x16x16xf32>, vector<2x16x16xf32> -> vector<2x32x16xf32>
    %cst_14 = arith.constant dense<0xFF800000> : vector<2x32xf32>
    %55 = vector.multi_reduction <maximumf>, %54, %cst_14 [2] : vector<2x32x16xf32> to vector<2x32xf32>
    %56 = vector.shape_cast %55 : vector<2x32xf32> to vector<2x32x1xf32>
    %57 = vector.broadcast %56 : vector<2x32x1xf32> to vector<2x32x16xf32>
    %58 = arith.subf %54, %57 : vector<2x32x16xf32>
    %59 = math.exp %58 : vector<2x32x16xf32>
    %cst_15 = arith.constant dense<0.000000e+00> : vector<2x32xf32>
    %60 = vector.multi_reduction <add>, %59, %cst_15 [2] : vector<2x32x16xf32> to vector<2x32xf32>
    %61 = vector.shape_cast %60 : vector<2x32xf32> to vector<2x32x1xf32>
    %62 = tpu.reciprocal %61 {approx = true} : vector<2x32x1xf32> -> vector<2x32x1xf32>
    %63 = vector.broadcast %62 : vector<2x32x1xf32> to vector<2x32x16xf32>
    %64 = arith.mulf %59, %63 : vector<2x32x16xf32>
    %cst_16 = arith.constant 0.000000e+00 : f32
    %65 = vector.broadcast %cst_16 : f32 to vector<16x32xf32>
    %66 = vector.extract_strided_slice %64 {offsets = [0, 0, 0], sizes = [2, 16, 16], strides = [1, 1, 1]} : vector<2x32x16xf32> to vector<2x16x16xf32>
    %67 = arith.truncf %66 : vector<2x16x16xf32> to vector<2x16x16xbf16>
    %68 = arith.truncf %33 : vector<2x16x16xf32> to vector<2x16x16xbf16>
    "tpu.trace_start"() <{level = 10 : i32, message = "bqk,bkd->bqd"}> : () -> ()
    %cst_17 = arith.constant dense<0.000000e+00> : vector<2x16x16xf32>
    %69 = tpu.matmul %67, %68, %cst_17 {dimension_numbers = #tpu.dot_dimension_numbers<[2], [1], [1], [2], [0, 0, 0, 1, 1, 2], [0], [0]>} : vector<2x16x16xbf16>, vector<2x16x16xbf16>, vector<2x16x16xf32> -> vector<2x16x16xf32>
    "tpu.trace_stop"() : () -> ()
    %70 = vector.extract_strided_slice %69 {offsets = [0, 0, 0], sizes = [2, 8, 16], strides = [1, 1, 1]} : vector<2x16x16xf32> to vector<2x8x16xf32>
    %71 = vector.shape_cast %70 : vector<2x8x16xf32> to vector<16x16xf32>
    %72 = vector.extract_strided_slice %5 {offsets = [0, 0], sizes = [16, 32], strides = [1, 1]} : vector<64x32xf32> to vector<16x32xf32>
    %73 = arith.truncf %71 : vector<16x16xf32> to vector<16x16xbf16>
    %74 = arith.truncf %72 : vector<16x32xf32> to vector<16x32xbf16>
    %cst_18 = arith.constant dense<0.000000e+00> : vector<16x32xf32>
    %75 = tpu.matmul %73, %74, %cst_18 {dimension_numbers = #tpu.dot_dimension_numbers<[1], [0], [0], [1], [0, 0, 1, 1], [], []>} : vector<16x16xbf16>, vector<16x32xbf16>, vector<16x32xf32> -> vector<16x32xf32>
    %76 = arith.addf %65, %75 : vector<16x32xf32>
    %77 = vector.extract_strided_slice %69 {offsets = [0, 8, 0], sizes = [2, 8, 16], strides = [1, 1, 1]} : vector<2x16x16xf32> to vector<2x8x16xf32>
    %78 = vector.shape_cast %77 : vector<2x8x16xf32> to vector<16x16xf32>
    %79 = vector.extract_strided_slice %5 {offsets = [16, 0], sizes = [16, 32], strides = [1, 1]} : vector<64x32xf32> to vector<16x32xf32>
    %80 = arith.truncf %78 : vector<16x16xf32> to vector<16x16xbf16>
    %81 = arith.truncf %79 : vector<16x32xf32> to vector<16x32xbf16>
    %cst_19 = arith.constant dense<0.000000e+00> : vector<16x32xf32>
    %82 = tpu.matmul %80, %81, %cst_19 {dimension_numbers = #tpu.dot_dimension_numbers<[1], [0], [0], [1], [0, 0, 1, 1], [], []>} : vector<16x16xbf16>, vector<16x32xbf16>, vector<16x32xf32> -> vector<16x32xf32>
    %83 = arith.addf %76, %82 : vector<16x32xf32>
    %84 = vector.extract_strided_slice %64 {offsets = [0, 16, 0], sizes = [2, 16, 16], strides = [1, 1, 1]} : vector<2x32x16xf32> to vector<2x16x16xf32>
    %85 = arith.truncf %84 : vector<2x16x16xf32> to vector<2x16x16xbf16>
    %86 = arith.truncf %45 : vector<2x16x16xf32> to vector<2x16x16xbf16>
    "tpu.trace_start"() <{level = 10 : i32, message = "bqk,bkd->bqd"}> : () -> ()
    %cst_20 = arith.constant dense<0.000000e+00> : vector<2x16x16xf32>
    %87 = tpu.matmul %85, %86, %cst_20 {dimension_numbers = #tpu.dot_dimension_numbers<[2], [1], [1], [2], [0, 0, 0, 1, 1, 2], [0], [0]>} : vector<2x16x16xbf16>, vector<2x16x16xbf16>, vector<2x16x16xf32> -> vector<2x16x16xf32>
    "tpu.trace_stop"() : () -> ()
    %88 = vector.extract_strided_slice %87 {offsets = [0, 0, 0], sizes = [2, 8, 16], strides = [1, 1, 1]} : vector<2x16x16xf32> to vector<2x8x16xf32>
    %89 = vector.shape_cast %88 : vector<2x8x16xf32> to vector<16x16xf32>
    %90 = vector.extract_strided_slice %5 {offsets = [32, 0], sizes = [16, 32], strides = [1, 1]} : vector<64x32xf32> to vector<16x32xf32>
    %91 = arith.truncf %89 : vector<16x16xf32> to vector<16x16xbf16>
    %92 = arith.truncf %90 : vector<16x32xf32> to vector<16x32xbf16>
    %cst_21 = arith.constant dense<0.000000e+00> : vector<16x32xf32>
    %93 = tpu.matmul %91, %92, %cst_21 {dimension_numbers = #tpu.dot_dimension_numbers<[1], [0], [0], [1], [0, 0, 1, 1], [], []>} : vector<16x16xbf16>, vector<16x32xbf16>, vector<16x32xf32> -> vector<16x32xf32>
    %94 = arith.addf %83, %93 : vector<16x32xf32>
    %95 = vector.extract_strided_slice %87 {offsets = [0, 8, 0], sizes = [2, 8, 16], strides = [1, 1, 1]} : vector<2x16x16xf32> to vector<2x8x16xf32>
    %96 = vector.shape_cast %95 : vector<2x8x16xf32> to vector<16x16xf32>
    %97 = vector.extract_strided_slice %5 {offsets = [48, 0], sizes = [16, 32], strides = [1, 1]} : vector<64x32xf32> to vector<16x32xf32>
    %98 = arith.truncf %96 : vector<16x16xf32> to vector<16x16xbf16>
    %99 = arith.truncf %97 : vector<16x32xf32> to vector<16x32xbf16>
    %cst_22 = arith.constant dense<0.000000e+00> : vector<16x32xf32>
    %100 = tpu.matmul %98, %99, %cst_22 {dimension_numbers = #tpu.dot_dimension_numbers<[1], [0], [0], [1], [0, 0, 1, 1], [], []>} : vector<16x16xbf16>, vector<16x32xbf16>, vector<16x32xf32> -> vector<16x32xf32>
    %101 = arith.addf %94, %100 : vector<16x32xf32>
    %102 = vector.shape_cast %101 : vector<16x32xf32> to vector<2x8x32xf32>
    %c0_23 = arith.constant 0 : index
    %c0_24 = arith.constant 0 : index
    %c0_25 = arith.constant 0 : index
    %103 = vector.load %arg6[%c0_23, %c0_24, %c0_25] : memref<2x8x32xf32, #tpu.memory_space<vmem>>, vector<2x8x32xf32>
    tpu.vector_store %arg6[%c0_23, %c0_24, %c0_25], %102 {strides = array<i32>} : memref<2x8x32xf32, #tpu.memory_space<vmem>>, vector<2x8x32xf32>,
    return
  }
  func.func @transform_0(%arg0: i32) -> (i32, i32, i32) {
    %c0_i32 = arith.constant 0 : i32
    %c0_i32_0 = arith.constant 0 : i32
    %c0_i32_1 = arith.constant 0 : i32
    %c0_i32_2 = arith.constant 0 : i32
    return %c0_i32, %c0_i32_0, %c0_i32_1 : i32, i32, i32
  }
  func.func @transform_1(%arg0: i32) -> (i32, i32, i32) {
    %c0_i32 = arith.constant 0 : i32
    %c0_i32_0 = arith.constant 0 : i32
    %c0_i32_1 = arith.constant 0 : i32
    %c0_i32_2 = arith.constant 0 : i32
    return %c0_i32, %c0_i32_0, %c0_i32_1 : i32, i32, i32
  }
  func.func @transform_2(%arg0: i32) -> (i32, i32) {
    %c0_i32 = arith.constant 0 : i32
    %c0_i32_0 = arith.constant 0 : i32
    %c0_i32_1 = arith.constant 0 : i32
    return %c0_i32, %c0_i32_0 : i32, i32
  }
  func.func @transform_3(%arg0: i32) -> (i32, i32) {
    %c0_i32 = arith.constant 0 : i32
    %c0_i32_0 = arith.constant 0 : i32
    %c0_i32_1 = arith.constant 0 : i32
    return %c0_i32, %c0_i32_0 : i32, i32
  }
  func.func @transform_4(%arg0: i32) -> (i32, i32) {
    %c0_i32 = arith.constant 0 : i32
    %c0_i32_0 = arith.constant 0 : i32
    %c0_i32_1 = arith.constant 0 : i32
    return %c0_i32, %c0_i32_0 : i32, i32
  }
  func.func @transform_5(%arg0: i32) -> (i32, i32, i32) {
    %c0_i32 = arith.constant 0 : i32
    %c0_i32_0 = arith.constant 0 : i32
    %c0_i32_1 = arith.constant 0 : i32
    %c0_i32_2 = arith.constant 0 : i32
    return %c0_i32, %c0_i32_0, %c0_i32_1 : i32, i32, i32
  }
}

</mosaic_0001>

<bundles_post_ra>
// kernel: tpu_custom_call.1
= control target key start
LH: loop header
LB: loop body
LE: loop exit
PB: predicated region body
PF: predicated region fallthrough
CT: control target
= control target key end

     0   :  { %10 = vsyncpa [#allocation3], 0  ;;  %s944_s0 = inlined_call_operand.hbm [shape: f32[2,8,32], index: 0, kind: input, shape index: {}]   ;;  %s945_s1 = inlined_call_operand.vmem [shape: f32[2,16,32], index: 1, kind: input, shape index: {}]   ;;  %s946_s2 = inlined_call_operand.vmem [shape: f32[32,256], index: 2, kind: input, shape index: {}]   ;;  %s947_s3 = inlined_call_operand.vmem [shape: f32[64,32], index: 3, kind: input, shape index: {}]   ;;  %s948_s4 = inlined_call_operand.hbm [shape: f32[48,128], index: 4, kind: input, shape index: {}]   ;;  %s949_s5 = inlined_call_operand.hbm [shape: f32[2,8,32], index: 5, kind: output, shape index: {}]  }
   0x1   :  { %11 = vsyncpa [#allocation6], 0 }
   0x2   :  { %12 = vsyncpa [#allocation4], 0  ;;  %s17_s20 = sshll.u32 %s944_s0, 4  ;;  %s744_s21 = smov [#allocation2]   ;;  %s18_s20 = int_to_ptr.hbm [resolvable:$true] %s17_s20 }
   0x3   :  { %s19_s22 = sshll.u32 %s744_s21, 4  ;;  %s36_s25 = sshll.u32 %s948_s4, 4  ;;  %s20_s22 = int_to_ptr.vmem [resolvable:$true] %s19_s22  ;;  %s37_s25 = int_to_ptr.hbm [resolvable:$true] %s36_s25 }
   0x4   :  { %s745_s26 = smov 128   ;;  %s746_s27 = smov 8  }
   0x5   :  { %25 = dma.hbm_to_vmem [thread:$0]  %s18_s20, 256, %s20_s22, [#allocation3], %s745_s26, %s745_s26, %s746_s27  }
   0x6   :  { %s747_s28 = smov [#allocation5]  }
   0x7   :  { %s38_s29 = sshll.u32 %s747_s28, 4  ;;  %s39_s29 = int_to_ptr.vmem [resolvable:$true] %s38_s29 }
   0x8   :  { %44 = dma.hbm_to_vmem [thread:$0]  %s37_s25, 768, %s39_s29, [#allocation6], %s745_s26, %s745_s26, %s746_s27  }
   0x9   :  { %738 = dma.done.wait [#allocation3], 256  }
   0xa   :  { %739 = vsyncadd [#allocation3], 4294967040 }
   0xb   :  { %740 = dma.done.wait [#allocation6], 768  }
   0xc   :  { %741 = vsyncadd [#allocation6], 4294966528  ;;  %v64_v0 = vld [vmem:[%s946_s2 + $0x20] sm:$0xff]  ;;  %v66_v1 = vld [vmem:[%s946_s2 + $0x30] sm:$0xff]  ;;  %vm85_vm0 = vcmask 261120   ;;  %s748_s28 = smov 64  }
   0xd   :  { %v65_v2 = vld [vmem:[%s946_s2 + $0x28] sm:$0xff]  ;;  %v84_v3 = vpack.c.bf16 %v66_v1, %v64_v0  ;;  %v67_v4 = vld [vmem:[%s946_s2 + $0x38] sm:$0xff]  ;;  %v60_v5 = vld [vmem:[%s946_s2] sm:$0xff]  ;;  %s749_s29 = smov 96   ;;  %vm194_vm1 = vcmask 130048   ;;  %s751_s0 = smov 48  }
   0xe   :  { %v62_v6 = vld [vmem:[%s946_s2 + $0x10] sm:$0xff]  ;;  %v106_v7 = vpack.c.bf16 %v67_v4, %v65_v2  ;;  %v61_v8 = vld [vmem:[%s946_s2 + $0x8] sm:$0xff]  ;;  %v63_v9 = vld [vmem:[%s946_s2 + $0x18] sm:$0xff]  ;;  %s591_s2 = sshll.u32 %s949_s5, 4  ;;  %s592_s2 = int_to_ptr.hbm [resolvable:$true] %s591_s2 }
   0xf   :  { %95 = vmatpush.bf16.msra.mxu0 %v84_v3  ;;  %v83_v10 = vpack.c.bf16 %v62_v6, %v60_v5  ;;  %v54_v11 = vld [vmem:[#allocation2] sm:$0xff]  ;;  %v55_v12 = vld [vmem:[#allocation2 + $0x8] sm:$0xff]  ;;  %v105_v13 = vpack.c.bf16 %v63_v9, %v61_v8  ;;  %v58_v18 = vld [vmem:[%s945_s1 + $0x10] sm:$0xff] }
  0x10   :  { %119 = vmatpush.bf16.msra.mxu1 %v106_v7  ;;  %v56_v14 = vld [vmem:[%s945_s1] sm:$0xff]  ;;  %v57_v15 = vld [vmem:[%s945_s1 + $0x8] sm:$0xff]  ;;  %v82_v16 = vpack.c.bf16 %v55_v12, %v54_v11  ;;  %v59_v19 = vld [vmem:[%s945_s1 + $0x18] sm:$0xff]  ;;  %s750_s1 = smov 112  }
  0x11   :  { %v103_v17 = vpack.c.bf16 %v57_v15, %v56_v14  ;;  %v104_v20 = vpack.c.bf16 %v59_v19, %v58_v18  ;;  %v76_v21 = vld [vmem:[#allocation5] sm:$0xff]  ;;  %v78_v22 = vld [vmem:[#allocation5 + $0x10] sm:$0xff]  ;;  %v77_v27 = vld [vmem:[#allocation5 + $0x8] sm:$0xff] }
  0x12   :  { %v79_v28 = vld [vmem:[#allocation5 + $0x18] sm:$0xff]  ;;  %v80_v33 = vld [vmem:[#allocation5 + $0x20] sm:$0xff]  ;;  %v81_v36 = vld [vmem:[#allocation5 + $0x28] sm:$0xff] }
  0x13   :  { %96 = vmatpush.bf16.msra.mxu0 %v83_v10 }
  0x14   :  { %120 = vmatpush.bf16.msra.mxu1 %v105_v13 }
  0x16   :  { %605 = vmatmul.msk.bf16.vlgmr.msra.gmra.mxu0 %vm85_vm0, %v82_v16 }
  0x17   :  { %606 = vmatmul.msk.bf16.vlgmr.msra.gmra.mxu1 %vm85_vm0, %v103_v17 }
  0x27   :  { %607 = vmatmul.msk.bf16.gmra.mxu1 %vm85_vm0, %v104_v20 }
  0x93   :  { %v98_v23 = vpop.f32.mrf.mxu0 }
  0x94   :  { %v132_v24 = vmul.f32 %v98_v23, %v76_v21  ;;  %v122_v25 = vpop.f32.mrf.mxu1 }
  0x95   :  { %v144_v26 = vmul.f32 %v122_v25, %v78_v22  ;;  %v385_v39 = vpack.c.bf16 %v122_v25, %v122_v25 }
  0x96   :  { %136 = vrot.lane.b32.xlu0 %v132_v24, %s748_s28 }
  0x97   :  { %152 = vrot.lane.b32.xlu1 %v144_v26, %s749_s29  ;;  %v396_v41 = vunpack.c.l.b16 %v385_v39 }
  0x9b   :  { %v100_v29 = vpop.f32.mrf.mxu0 }
  0x9c   :  { %v133_v30 = vmul.f32 %v100_v29, %v77_v27  ;;  %v124_v31 = vpop.f32.mrf.mxu1 }
  0x9d   :  { %v145_v32 = vmul.f32 %v124_v31, %v79_v28  ;;  %v386_v40 = vpack.c.bf16 %v124_v31, %v124_v31 }
  0x9e   :  { %138 = vrot.lane.b32.xlu0 %v133_v30, %s748_s28 }
  0x9f   :  { %154 = vrot.lane.b32.xlu1 %v145_v32, %s749_s29  ;;  %v397_v42 = vunpack.c.l.b16 %v386_v40 }
  0xa1   :  { %v846_v43 = vpack.c.b16 %v397_v42, %v396_v41 }
  0xa4   :  { %v838_v34 = vpop.f32.mrf.mxu1 }
  0xa5   :  { %v146_v35 = vmul.f32 %v838_v34, %v80_v33 }
  0xa7   :  { %156 = vrot.lane.b32.xlu2 %v146_v35, %s749_s29 }
  0xac   :  { %v842_v37 = vpop.f32.mrf.mxu1 }
  0xad   :  { %v147_v38 = vmul.f32 %v842_v37, %v81_v36 }
  0xaf   :  { %158 = vrot.lane.b32.xlu2 %v147_v38, %s749_s29 }
 0x101   :  { %v157_v44 = vpop.permute.xlu2 %156 }
 0x102   :  { %v166_v45 = vadd.f32 %v157_v44, %v146_v35 }
 0x104   :  { %v182_v47 = vpack.c.bf16 %v166_v45, %v166_v45 }
 0x106   :  { %v222_v51 = vunpack.c.l.b16 %v182_v47 }
 0x108   :  { %v137_v46 = vpop.permute.xlu0 %136 }
 0x109   :  { %v153_v48 = vpop.permute.xlu1 %152  ;;  %v159_v49 = vpop.permute.xlu2 %158  ;;  %v142_v57 = vadd.f32 %v137_v46, %v132_v24 }
 0x10a   :  { %v167_v50 = vadd.f32 %v159_v49, %v147_v38  ;;  %v164_v53 = vadd.f32 %v153_v48, %v144_v26 }
 0x10b   :  { %v176_v8 = vpack.c.bf16 %v142_v57, %v142_v57 }
 0x10c   :  { %v183_v52 = vpack.c.bf16 %v167_v50, %v167_v50  ;;  %v180_v60 = vpack.c.bf16 %v164_v53, %v164_v53 }
 0x10d   :  { %v186_v14 = vunpack.c.l.b16 %v176_v8 }
 0x10e   :  { %v223_v54 = vunpack.c.l.b16 %v183_v52  ;;  %v191_v1 = vunpack.c.l.b16 %v180_v60 }
 0x110   :  { %v139_v55 = vpop.permute.xlu0 %138  ;;  %v224_v56 = vpack.c.b16 %v223_v54, %v222_v51 }
 0x111   :  { %v155_v58 = vpop.permute.xlu1 %154  ;;  %v143_v59 = vadd.f32 %v139_v55, %v133_v30 }
 0x112   :  { %v165_v61 = vadd.f32 %v155_v58, %v145_v32  ;;  %271 = vrot.lane.b32.xlu2 %v224_v56, %s750_s1  ;;  %v229_v62 = vsel %vm194_vm1, %v224_v56, 0 }
 0x113   :  { %v629_v63 = vpack.i.bf16 %v143_v59, %v142_v57  ;;  %238 = vmatpush.bf16.xpose.msra.mxu3 %v229_v62  ;;  %v178_v9 = vpack.c.bf16 %v143_v59, %v143_v59 }
 0x114   :  { %v181_v0 = vpack.c.bf16 %v165_v61, %v165_v61 }
 0x115   :  { %630 = vrot.lane.b32.xlu0 %v629_v63, %s750_s1  ;;  %v217_v15 = vunpack.c.l.b16 %v178_v9 }
 0x116   :  { %v192_v2 = vunpack.c.l.b16 %v181_v0 }
 0x118   :  { %v193_v3 = vpack.c.b16 %v192_v2, %v191_v1 }
 0x11a   :  { %247 = vrot.lane.b32.xlu1 %v193_v3, %s750_s1  ;;  %v199_v4 = vsel %vm194_vm1, %v193_v3, 0 }
 0x11b   :  { %208 = vmatpush.bf16.xpose.msra.mxu2 %v199_v4 }
 0x16c   :  { %v272_v5 = vpop.permute.xlu2 %271 }
 0x16d   :  { %v277_v6 = vsel %vm194_vm1, %v272_v5, 0 }
 0x16e   :  { %286 = vmatpush.bf16.xpose.msrb.mxu2 %v277_v6 }
 0x187   :  { %v631_v7 = vpop.permute.xlu0 %630 }
 0x188   :  { %v633_v10 = vunpack.i.h.bf16 %v631_v7  ;;  %v632_v11 = vunpack.i.l.bf16 %v631_v7 }
 0x18a   :  { %v179_v12 = vpack.c.bf16 %v633_v10, %v633_v10  ;;  %v177_v13 = vpack.c.bf16 %v632_v11, %v632_v11 }
 0x18c   :  { %v218_v16 = vunpack.c.l.b16 %v179_v12  ;;  %v187_v17 = vunpack.c.l.b16 %v177_v13  ;;  %v248_v18 = vpop.permute.xlu1 %247 }
 0x18d   :  { %v253_v19 = vsel %vm194_vm1, %v248_v18, 0 }
 0x18e   :  { %262 = vmatpush.bf16.xpose.msrb.mxu0 %v253_v19  ;;  %v188_v20 = vpack.c.b16 %v187_v17, %v186_v14  ;;  %v219_v21 = vpack.c.b16 %v218_v16, %v217_v15  ;;  %v387_v15 = vpack.c.bf16 %v838_v34, %v838_v34  ;;  %v388_v16 = vpack.c.bf16 %v842_v37, %v842_v37 }
 0x190   :  { %245 = vrot.lane.b32.xlu0 %v188_v20, %s749_s29  ;;  %608 = vmatmul.msk.bf16.vlgmr.msra.gmra.mxu2 %vm194_vm1, %v188_v20  ;;  %v426_v18 = vunpack.c.l.b16 %v387_v15  ;;  %v427_v19 = vunpack.c.l.b16 %v388_v16  ;;  %v72_v16 = vld [vmem:[%s947_s3 + $0x20] sm:$0xff] }
 0x191   :  { %269 = vrot.lane.b32.xlu1 %v219_v21, %s749_s29  ;;  %609 = vmatmul.msk.bf16.vlgmr.msra.gmra.mxu3 %vm194_vm1, %v219_v21 }
 0x202   :  { %v246_v22 = vpop.permute.xlu0 %245 }
 0x203   :  { %v270_v23 = vpop.permute.xlu1 %269  ;;  %610 = vmatmul.msk.bf16.vlgmr.msrb.gmra.mxu0 %vm194_vm1, %v246_v22  ;;  %v428_v22 = vpack.c.b16 %v427_v19, %v426_v18 }
 0x204   :  { %611 = vmatmul.msk.bf16.vlgmr.msrb.gmra.mxu2 %vm194_vm1, %v270_v23 }
 0x213   :  { %v210_v24 = vpop.f32.mrf.mxu2 }
 0x214   :  { %v240_v25 = vpop.f32.mrf.mxu3  ;;  %v293_v26 = vsel %vm194_vm1, %v210_v24, -inf }
 0x215   :  { %294 = vmax.xlane.f32.xlu2 %v293_v26  ;;  %v305_v27 = vsel %vm194_vm1, %v240_v25, -inf }
 0x216   :  { %306 = vmax.xlane.f32.xlu1 %v305_v27 }
 0x21b   :  { %v212_v28 = vpop.f32.mrf.mxu2 }
 0x21c   :  { %v242_v29 = vpop.f32.mrf.mxu3  ;;  %v296_v30 = vsel %vm194_vm1, %v212_v28, -inf }
 0x21d   :  { %297 = vmax.xlane.f32.xlu0 %v296_v30  ;;  %v308_v31 = vsel %vm194_vm1, %v242_v29, -inf }
 0x21e   :  { %309 = vmax.xlane.f32.xlu2 %v308_v31 }
 0x280   :  { %v264_v32 = vpop.f32.mrf.mxu0 }
 0x281   :  { %v299_v33 = vsel %vm194_vm1, %v264_v32, -inf }
 0x282   :  { %300 = vmax.xlane.f32.xlu2 %v299_v33 }
 0x287   :  { %v288_v35 = vpop.f32.mrf.mxu2 }
 0x288   :  { %v266_v36 = vpop.f32.mrf.mxu0  ;;  %v295_v38 = vpop.xlane.xlu2 %294  ;;  %v311_v39 = vsel %vm194_vm1, %v288_v35, -inf }
 0x289   :  { %v317_v40 = vsub.f32 %v210_v24, %v295_v38  ;;  %312 = vmax.xlane.f32.xlu1 %v311_v39  ;;  %v307_v41 = vpop.xlane.xlu1 %306  ;;  %v302_v42 = vsel %vm194_vm1, %v266_v36, -inf }
 0x28a   :  { %v321_v44 = vsub.f32 %v240_v25, %v307_v41  ;;  %303 = vmax.xlane.f32.xlu0 %v302_v42 }
 0x28b   :  { %v325_v45 = vmul.f32 1.442695, %v317_v40 }
 0x28c   :  { %v333_v46 = vmul.f32 1.442695, %v321_v44 }
 0x28d   :  { %634 = vpow2.f32 %v325_v45 }
 0x28e   :  { %636 = vpow2.f32 %v333_v46 }
 0x28f   :  { %v290_v47 = vpop.f32.mrf.mxu2 }
 0x290   :  { %v314_v48 = vsel %vm194_vm1, %v290_v47, -inf  ;;  %v298_v58 = vpop.xlane.xlu0 %297 }
 0x291   :  { %315 = vmax.xlane.f32.xlu2 %v314_v48  ;;  %v310_v49 = vpop.xlane.xlu2 %309  ;;  %v318_v59 = vsub.f32 %v212_v28, %v298_v58 }
 0x292   :  { %v322_v50 = vsub.f32 %v242_v29, %v310_v49 }
 0x293   :  { %v866_v51 = vpop.eup %634  ;;  %v327_v60 = vmul.f32 1.442695, %v318_v59 }
 0x294   :  { %v335_v52 = vmul.f32 1.442695, %v322_v50  ;;  %v341_v53 = vsel %vm194_vm1, %v866_v51, 0.0  ;;  %v870_v54 = vpop.eup %636 }
 0x295   :  { %342 = vadd.xlane.f32.xlu0 %v341_v53  ;;  %v353_v55 = vsel %vm194_vm1, %v870_v54, 0.0 }
 0x296   :  { %638 = vpow2.f32 %v335_v52 }
 0x297   :  { %640 = vpow2.f32 %v327_v60 }
 0x299   :  { %354 = vadd.xlane.f32.xlu2 %v353_v55 }
 0x29c   :  { %v874_v56 = vpop.eup %638 }
 0x29d   :  { %v356_v57 = vsel %vm194_vm1, %v874_v56, 0.0  ;;  %v641_v61 = vpop.eup %640 }
 0x29e   :  { %357 = vadd.xlane.f32.xlu0 %v356_v57  ;;  %v344_v62 = vsel %vm194_vm1, %v641_v61, 0.0 }
 0x2a2   :  { %399 = vrot.lane.b32.xlu1 %v846_v43, %s748_s28 }
 0x2cc   :  { %345 = vadd.xlane.f32.xlu1 %v344_v62 }
 0x2e5   :  { %496 = vrot.lane.b32.xlu1 %v846_v43, %s751_s0 }
 0x2f5   :  { %v301_v63 = vpop.xlane.xlu2 %300 }
 0x2f6   :  { %v319_v0 = vsub.f32 %v264_v32, %v301_v63 }
 0x2f8   :  { %v329_v1 = vmul.f32 1.442695, %v319_v0 }
 0x2fa   :  { %642 = vpow2.f32 %v329_v1 }
 0x2fc   :  { %v313_v2 = vpop.xlane.xlu1 %312 }
 0x2fd   :  { %v304_v3 = vpop.xlane.xlu0 %303  ;;  %v323_v6 = vsub.f32 %v288_v35, %v313_v2 }
 0x2fe   :  { %v320_v4 = vsub.f32 %v266_v36, %v304_v3 }
 0x2ff   :  { %v337_v9 = vmul.f32 1.442695, %v323_v6 }
 0x300   :  { %v883_v5 = vpop.eup %642  ;;  %v331_v7 = vmul.f32 1.442695, %v320_v4 }
 0x301   :  { %v347_v8 = vsel %vm194_vm1, %v883_v5, 0.0 }
 0x302   :  { %644 = vpow2.f32 %v331_v7  ;;  %348 = vadd.xlane.f32.xlu2 %v347_v8  ;;  %v68_v8 = vld [vmem:[%s947_s3] sm:$0xff] }
 0x303   :  { %646 = vpow2.f32 %v337_v9  ;;  %v69_v9 = vld [vmem:[%s947_s3 + $0x8] sm:$0xff] }
 0x304   :  { %v316_v10 = vpop.xlane.xlu2 %315 }
 0x305   :  { %v324_v43 = vsub.f32 %v290_v47, %v316_v10  ;;  %v450_v10 = vpack.c.bf16 %v69_v9, %v68_v8 }
 0x307   :  { %v339_v13 = vmul.f32 1.442695, %v324_v43  ;;  %480 = vmatpush.bf16.msra.mxu2 %v450_v10  ;;  %v71_v43 = vld [vmem:[%s947_s3 + $0x18] sm:$0xff] }
 0x308   :  { %v645_v11 = vpop.eup %644  ;;  %v343_v34 = vpop.xlane.xlu0 %342 }
 0x309   :  { %v350_v12 = vsel %vm194_vm1, %v645_v11, 0.0  ;;  %v888_v14 = vpop.eup %646  ;;  %648 = vpow2.f32 %v339_v13 }
 0x30a   :  { %351 = vadd.xlane.f32.xlu0 %v350_v12  ;;  %v359_v17 = vsel %vm194_vm1, %v888_v14, 0.0  ;;  %650 = vrcp.f32 %v343_v34 }
 0x30c   :  { %v355_v36 = vpop.xlane.xlu2 %354 }
 0x30f   :  { %v649_v21 = vpop.eup %648 }
 0x310   :  { %v362_v23 = vsel %vm194_vm1, %v649_v21, 0.0  ;;  %v651_v24 = vpop.eup %650 }
 0x311   :  { %v373_v25 = vmul.f32 %v651_v24, %v866_v51  ;;  %v358_v35 = vpop.xlane.xlu0 %357 }
 0x312   :  { %360 = vadd.xlane.f32.xlu0 %v359_v17  ;;  %v73_v17 = vld [vmem:[%s947_s3 + $0x28] sm:$0xff] }
 0x313   :  { %v381_v27 = vpack.c.bf16 %v373_v25, %v373_v25  ;;  %v542_v18 = vpack.c.bf16 %v73_v17, %v72_v16 }
 0x314   :  { %v400_v20 = vpop.permute.xlu1 %399 }
 0x315   :  { %412 = vmatpush.bf16.msrb.mxu3 %v400_v20  ;;  %v391_v30 = vunpack.c.l.b16 %v381_v27 }
 0x31a   :  { %429 = vrot.lane.b32.xlu2 %v428_v22, %s748_s28  ;;  %363 = vadd.xlane.f32.xlu0 %v362_v23  ;;  %v75_v23 = vld [vmem:[%s947_s3 + $0x38] sm:$0xff] }
 0x32e   :  { %521 = vrot.lane.b32.xlu0 %v428_v22, %s751_s0  ;;  %v74_v22 = vld [vmem:[%s947_s3 + $0x30] sm:$0xff] }
 0x32f   :  { %v563_v34 = vpack.c.bf16 %v75_v23, %v74_v22 }
 0x331   :  { %574 = vmatpush.bf16.msrb.mxu2 %v563_v34 }
 0x33f   :  { %v346_v37 = vpop.xlane.xlu1 %345 }
 0x340   :  { %652 = vrcp.f32 %v346_v37 }
 0x341   :  { %654 = vrcp.f32 %v358_v35 }
 0x342   :  { %656 = vrcp.f32 %v355_v36 }
 0x346   :  { %v653_v26 = vpop.eup %652 }
 0x347   :  { %v374_v28 = vmul.f32 %v653_v26, %v641_v61  ;;  %v655_v38 = vpop.eup %654 }
 0x348   :  { %v657_v39 = vpop.eup %656  ;;  %v378_v40 = vmul.f32 %v655_v38, %v874_v56 }
 0x349   :  { %v382_v29 = vpack.c.bf16 %v374_v28, %v374_v28  ;;  %v377_v41 = vmul.f32 %v657_v39, %v870_v54 }
 0x34a   :  { %v384_v44 = vpack.c.bf16 %v378_v40, %v378_v40 }
 0x34b   :  { %v392_v31 = vunpack.c.l.b16 %v382_v29  ;;  %v383_v45 = vpack.c.bf16 %v377_v41, %v377_v41 }
 0x34c   :  { %v422_v46 = vunpack.c.l.b16 %v384_v44 }
 0x34d   :  { %v393_v32 = vpack.c.b16 %v392_v31, %v391_v30  ;;  %v421_v47 = vunpack.c.l.b16 %v383_v45 }
 0x34f   :  { %612 = vmatmul.msk.bf16.vlgmr.msrb.gmra.mxu3 %vm194_vm1, %v393_v32  ;;  %v423_v51 = vpack.c.b16 %v422_v46, %v421_v47 }
 0x357   :  { %v497_v33 = vpop.permute.xlu1 %496 }
 0x358   :  { %509 = vmatpush.bf16.msra.mxu3 %v497_v33 }
 0x375   :  { %v349_v42 = vpop.xlane.xlu2 %348 }
 0x376   :  { %658 = vrcp.f32 %v349_v42 }
 0x37c   :  { %v659_v50 = vpop.eup %658 }
 0x37d   :  { %v352_v48 = vpop.xlane.xlu0 %351  ;;  %v430_v49 = vpop.permute.xlu2 %429  ;;  %v375_v52 = vmul.f32 %v659_v50, %v883_v5 }
 0x37e   :  { %660 = vrcp.f32 %v352_v48  ;;  %442 = vmatpush.bf16.msra.mxu0 %v430_v49 }
 0x37f   :  { %v487_v55 = vpack.c.bf16 %v375_v52, %v375_v52 }
 0x381   :  { %613 = vmatmul.msk.bf16.vlgmr.msra.gmra.mxu0 %vm194_vm1, %v423_v51  ;;  %v493_v58 = vunpack.c.l.b16 %v487_v55 }
 0x384   :  { %v661_v53 = vpop.eup %660 }
 0x385   :  { %v376_v56 = vmul.f32 %v661_v53, %v645_v11  ;;  %v361_v54 = vpop.xlane.xlu0 %360  ;;  %v70_v11 = vld [vmem:[%s947_s3 + $0x10] sm:$0xff]  ;;  %s752_s3 = smov [#allocation7]  }
 0x386   :  { %v452_v12 = vpack.c.bf16 %v71_v43, %v70_v11  ;;  %s589_s20 = sshll.u32 %s752_s3, 4  ;;  %s590_s20 = int_to_ptr.vmem [resolvable:$true] %s589_s20 }
 0x387   :  { %v488_v57 = vpack.c.bf16 %v376_v56, %v376_v56 }
 0x388   :  { %463 = vmatpush.bf16.msrb.mxu1 %v452_v12 }
 0x389   :  { %v494_v59 = vunpack.c.l.b16 %v488_v57 }
 0x38b   :  { %v495_v60 = vpack.c.b16 %v494_v59, %v493_v58 }
 0x38c   :  { %553 = vmatpush.bf16.msra.mxu1 %v542_v18 }
 0x38d   :  { %v364_v61 = vpop.xlane.xlu0 %363  ;;  %616 = vmatmul.msk.bf16.vlgmr.msra.gmra.mxu3 %vm194_vm1, %v495_v60 }
 0x38e   :  { %662 = vrcp.f32 %v364_v61 }
 0x38f   :  { %664 = vrcp.f32 %v361_v54 }
 0x394   :  { %v663_v62 = vpop.eup %662 }
 0x395   :  { %v665_v63 = vpop.eup %664  ;;  %v380_v0 = vmul.f32 %v663_v62, %v649_v21 }
 0x396   :  { %v379_v1 = vmul.f32 %v665_v63, %v888_v14 }
 0x397   :  { %v490_v2 = vpack.c.bf16 %v380_v0, %v380_v0 }
 0x398   :  { %v489_v3 = vpack.c.bf16 %v379_v1, %v379_v1 }
 0x399   :  { %v519_v4 = vunpack.c.l.b16 %v490_v2 }
 0x39a   :  { %v518_v5 = vunpack.c.l.b16 %v489_v3 }
 0x39c   :  { %v520_v7 = vpack.c.b16 %v519_v4, %v518_v5 }
 0x3a0   :  { %v522_v6 = vpop.permute.xlu0 %521 }
 0x3a1   :  { %534 = vmatpush.bf16.msrb.mxu0 %v522_v6 }
 0x3a4   :  { %617 = vmatmul.msk.bf16.vlgmr.msrb.gmra.mxu0 %vm194_vm1, %v520_v7 }
 0x3d2   :  { %v414_v13 = vpop.f32.mrf.mxu3 }
 0x3da   :  { %v416_v19 = vpop.f32.mrf.mxu3 }
 0x3fe   :  { %v444_v14 = vpop.f32.mrf.mxu0 }
 0x3ff   :  { %v449_v15 = vpack.c.bf16 %v444_v14, %v414_v13 }
 0x401   :  { %615 = vmatmul.msk.bf16.vlgmr.msra.gmra.mxu2 %vm194_vm1, %v449_v15 }
 0x406   :  { %v446_v20 = vpop.f32.mrf.mxu0 }
 0x407   :  { %v451_v21 = vpack.c.bf16 %v446_v20, %v416_v19 }
 0x409   :  { %614 = vmatmul.msk.bf16.vlgmr.msrb.gmra.mxu1 %vm194_vm1, %v451_v21 }
 0x410   :  { %v511_v37 = vpop.f32.mrf.mxu3 }
 0x418   :  { %v513_v26 = vpop.f32.mrf.mxu3 }
 0x421   :  { %v536_v24 = vpop.f32.mrf.mxu0 }
 0x422   :  { %v541_v25 = vpack.c.bf16 %v536_v24, %v511_v37 }
 0x424   :  { %618 = vmatmul.msk.bf16.vlgmr.msra.gmra.mxu1 %vm194_vm1, %v541_v25 }
 0x429   :  { %v538_v27 = vpop.f32.mrf.mxu0 }
 0x42a   :  { %v562_v28 = vpack.c.bf16 %v538_v27, %v513_v26 }
 0x42c   :  { %619 = vmatmul.msk.bf16.vlgmr.msrb.gmra.mxu2 %vm194_vm1, %v562_v28 }
 0x484   :  { %v482_v30 = vpop.f32.mrf.mxu2 }
 0x486   :  { %v465_v29 = vpop.f32.mrf.mxu1 }
 0x487   :  { %v483_v35 = vadd.f32 %v482_v30, %v465_v29 }
 0x48c   :  { %v484_v32 = vpop.f32.mrf.mxu2 }
 0x48e   :  { %v467_v31 = vpop.f32.mrf.mxu1 }
 0x48f   :  { %v485_v41 = vadd.f32 %v484_v32, %v467_v31 }
 0x4a1   :  { %v555_v33 = vpop.f32.mrf.mxu1 }
 0x4a2   :  { %v560_v36 = vadd.f32 %v555_v33, %v483_v35 }
 0x4a9   :  { %v557_v40 = vpop.f32.mrf.mxu1 }
 0x4aa   :  { %v561_v42 = vadd.f32 %v557_v40, %v485_v41 }
 0x4af   :  { %v576_v38 = vpop.f32.mrf.mxu2 }
 0x4b0   :  { %v581_v39 = vadd.f32 %v576_v38, %v560_v36 }
 0x4b2   :  { %583 = vst.msk [vmem:[#allocation7] sm:$0xff] %vm85_vm0, %v581_v39 }
 0x4b7   :  { %v578_v44 = vpop.f32.mrf.mxu2 }
 0x4b8   :  { %v582_v45 = vadd.f32 %v578_v44, %v561_v42 }
 0x4ba   :  { %584 = vst.msk [vmem:[#allocation7 + $0x8] sm:$0xff] %vm85_vm0, %v582_v45 }
 0x4bb   :  { %597 = dma.vmem_to_hbm [thread:$0]  %s590_s20, 256, %s592_s2, [#allocation4], %s745_s26, %s745_s26, %s746_s27  }
 0x4bc   :  { %742 = dma.done.wait [#allocation4], 256  }
 0x4bd   :  { %743 = vsyncadd [#allocation4], 4294967040 }
 0x4be   :  { %602 = vsyncpa [#allocation3], 1 }
 0x4bf   :  { %603 = vsyncpa [#allocation6], 1 }
 0x4c0   :  { %604 = vsyncpa [#allocation4], 1 }

</bundles_post_ra>
